<compile_context>
chip_gen: v7x
topology: tpu7x:2x2x1
jax: 0.10.0
libtpu: 0.0.40
codegen_flags: <defaults>
</compile_context>

<pallas_src>
import jax
import jax.numpy as jnp
from jax import lax
from jax.experimental import pallas as pl
from jax.experimental.pallas import tpu as pltpu

HIDDEN_SIZE = 32
INPUT_SIZE = 1
OUTPUT_SIZE = 1
NUM_LAYERS = 1   # module only ever uses 1 layer in its forward


def fedformer_kernel(x_ref, wih_ref, bias_ref, whh_ref, fcw_ref, fcb_ref, out_ref):
    """LSTM recurrence over T steps + last-step fc, for one batch block.

    x_ref    : (bb, T)    batch-major inputs (input_size == 1, feature dim squeezed)
    wih_ref  : (1, 4H)    weight_ih[:, 0]
    bias_ref : (1, 4H)    bias_ih + bias_hh
    whh_ref  : (H, 4H)    weight_hh^T (unpadded, 16 KB)
    fcw_ref  : (1, H)     fc.weight
    fcb_ref  : (1, 1)     fc.bias
    out_ref  : (1, bb) lane-dense  OR  (bb, 1) fallback
    """
    T = x_ref.shape[1]
    H = whh_ref.shape[0]

    # Tiny (1, 4H) rows: hoisting these costs 1 vreg each and saves repeated loads.
    wih = wih_ref[...]
    bias = bias_ref[...]

    h = None
    c = None
    # Static, fully-unrolled time loop (T is a compile-time constant); step 0 peeled.
    for t in range(T):
        # Input projection on the VPU (input_size == 1 -> broadcast multiply); depends
        # only on x, so it is off the serial h/c chain and freely schedulable.
        pre = x_ref[:, t:t + 1] * wih + bias                     # (bb, 4H)
        if t == 0:
            gates = pre                                          # h0 == 0: skip matmul
        else:
            # W_hh read from VMEM inside the loop (review: do not pin it in vregs).
            gates = pre + jnp.dot(h, whh_ref[...],
                                  preferred_element_type=jnp.float32)
        i = jax.nn.sigmoid(gates[:, 0 * H:1 * H])
        f = jax.nn.sigmoid(gates[:, 1 * H:2 * H])
        g = jnp.tanh(gates[:, 2 * H:3 * H])
        o = jax.nn.sigmoid(gates[:, 3 * H:4 * H])
        c = i * g if t == 0 else f * c + i * g                   # c0 == 0
        h = o * jnp.tanh(c)

    fcw = fcw_ref[...]                                           # (1, H)
    if out_ref.shape[0] == 1:
        # Lane-dense output (1, bb): fc as fcw @ h^T, batch lands along lanes.
        out_ref[...] = lax.dot_general(
            fcw, h, (((1,), (1,)), ((), ())),
            preferred_element_type=jnp.float32) + fcb_ref[...]
    else:
        # Fallback (bb, 1): VPU multiply + lane reduction (output_size == 1).
        out_ref[...] = jnp.sum(h * fcw, axis=-1, keepdims=True) + fcb_ref[...]
    # Dropout(p=0.1) in eval mode is identity -> nothing to do.


def _round_up(a, m):
    return (a + m - 1) // m * m


def fedformer_forward(x, params, *, batch_block=None):
    """x: (B, T, input_size) float32, batch-first like the PyTorch module."""
    B, T, I = x.shape
    assert I == INPUT_SIZE
    H = params["weight_hh"].shape[1]
    G4 = 4 * H

    x = x.astype(jnp.float32)
    w_ih = params["weight_ih"].astype(jnp.float32)                       # (4H, 1)
    w_hh = params["weight_hh"].astype(jnp.float32)                       # (4H, H)
    bias = (params["bias_ih"] + params["bias_hh"]).astype(jnp.float32)   # (4H,)

    wih_row = w_ih[:, 0].reshape(1, G4)
    bias_row = bias.reshape(1, G4)
    whh_t = w_hh.T                                                       # (H, 4H)
    fcw = params["fc_weight"].astype(jnp.float32).reshape(1, H)
    fcb = params["fc_bias"].astype(jnp.float32).reshape(1, 1)

    # --- batch block / padding policy -------------------------------------------------
    B8 = _round_up(B, 8)
    if batch_block is None:
        if B8 <= 8:
            bb = B8
        elif B8 <= 256:
            # >= 2 grid steps so v7x megacore can shard the "parallel" axis.
            bb = _round_up(pl.cdiv(B8, 2), 8)
        else:
            bb = 128
    else:
        bb = _round_up(batch_block, 8)
    B_pad = _round_up(B8, bb)          # no ragged edge blocks, ever
    grid = (B_pad // bb,)

    # Batch-major, contiguous per-block DMA; padded rows are zero (their outputs are
    # discarded below).
    x2d = jnp.zeros((B_pad, T), jnp.float32).at[:B, :].set(x[:, :, 0])

    # Lane-dense output block (1, bb) is only tileable if bb is a full-128 multiple or
    # the single block covers the whole (padded) batch.
    lane_dense = (bb == B_pad) or (bb % 128 == 0)
    if lane_dense:
        out_shape = jax.ShapeDtypeStruct((1, B_pad), jnp.float32)
        out_spec = pl.BlockSpec((1, bb), lambda b: (0, b))
    else:
        out_shape = jax.ShapeDtypeStruct((B_pad, 1), jnp.float32)
        out_spec = pl.BlockSpec((bb, 1), lambda b: (b, 0))

    in_specs = [
        pl.BlockSpec((bb, T), lambda b: (b, 0)),       # x block (contiguous)
        pl.BlockSpec((1, G4), lambda b: (0, 0)),       # w_ih row
        pl.BlockSpec((1, G4), lambda b: (0, 0)),       # bias row
        pl.BlockSpec((H, G4), lambda b: (0, 0)),       # W_hh^T
        pl.BlockSpec((1, H), lambda b: (0, 0)),        # fc.weight
        pl.BlockSpec((1, 1), lambda b: (0, 0)),        # fc.bias
    ]

    # Working set is tiny (tens of KB); size the scoped VMEM limit to it with headroom
    # for pipeline buffers / any compiler scratch.
    work_bytes = 4 * (2 * bb * T + 2 * (2 * G4 + H * G4 + H + 1) + 2 * max(bb, 8))
    vmem_limit = int(min(128 * 1024 * 1024, work_bytes + (2 << 20)))

    out = pl.pallas_call(
        fedformer_kernel,
        out_shape=out_shape,
        grid=grid,
        in_specs=in_specs,
        out_specs=out_spec,
        compiler_params=pltpu.CompilerParams(
            dimension_semantics=("parallel",),
            vmem_limit_bytes=vmem_limit,
        ),
    )(x2d, wih_row, bias_row, whh_t, fcw, fcb)

    if lane_dense:
        return out[0, :B].reshape(B, OUTPUT_SIZE)
    return out[:B, :]


def init_params(key, input_size=INPUT_SIZE, hidden_size=HIDDEN_SIZE,
                output_size=OUTPUT_SIZE):
    """Deterministic init matching PyTorch shapes: U(-1/sqrt(H), 1/sqrt(H))."""
    ks = jax.random.split(key, 6)
    bound = 1.0 / jnp.sqrt(jnp.float32(hidden_size))
    u = lambda k, shape: jax.random.uniform(k, shape, jnp.float32, -bound, bound)
    return {
        "weight_ih": u(ks[0], (4 * hidden_size, input_size)),   # lstm.weight_ih_l0
        "weight_hh": u(ks[1], (4 * hidden_size, hidden_size)),  # lstm.weight_hh_l0
        "bias_ih":   u(ks[2], (4 * hidden_size,)),              # lstm.bias_ih_l0
        "bias_hh":   u(ks[3], (4 * hidden_size,)),              # lstm.bias_hh_l0
        "fc_weight": u(ks[4], (output_size, hidden_size)),      # fc.weight
        "fc_bias":   u(ks[5], (output_size,)),                  # fc.bias
    }


def _reference_forward(x, params):
    """Pure-JAX reference of the PyTorch forward (eval mode)."""
    B, T, _ = x.shape
    H = HIDDEN_SIZE
    wih_t = params["weight_ih"].T
    whh_t = params["weight_hh"].T
    b = params["bias_ih"] + params["bias_hh"]

    def step(carry, xt):
        h, c = carry
        gates = xt @ wih_t + h @ whh_t + b
        i = jax.nn.sigmoid(gates[:, 0 * H:1 * H])
        f = jax.nn.sigmoid(gates[:, 1 * H:2 * H])
        g = jnp.tanh(gates[:, 2 * H:3 * H])
        o = jax.nn.sigmoid(gates[:, 3 * H:4 * H])
        c = f * c + i * g
        h = o * jnp.tanh(c)
        return (h, c), None

    h0 = jnp.zeros((B, H), jnp.float32)
    c0 = jnp.zeros((B, H), jnp.float32)
    (h_last, _), _ = lax.scan(step, (h0, c0), jnp.transpose(x, (1, 0, 2)))
    return h_last @ params["fc_weight"].T + params["fc_bias"]


if __name__ == "__main__":
    key = jax.random.PRNGKey(0)
    k_param, k_x = jax.random.split(key)

    B, T = 8, 8  # small shapes consistent with the module (input_size=1)
    params = init_params(k_param)
    x = jax.random.normal(k_x, (B, T, INPUT_SIZE), jnp.float32)

    out = jax.block_until_ready(fedformer_forward(x, params))
    ref = _reference_forward(x, params)
    assert out.shape == (B, OUTPUT_SIZE)
    assert jnp.allclose(out, ref, atol=1e-4, rtol=1e-4), "mismatch vs JAX reference (B=8)"

    # Second config exercises the multi-block grid (grid=2, padded batch, fallback
    # output layout) to make sure every wrapper path is correct.
    B2 = 24
    x2 = jax.random.normal(jax.random.PRNGKey(1), (B2, T, INPUT_SIZE), jnp.float32)
    out2 = jax.block_until_ready(fedformer_forward(x2, params))
    ref2 = _reference_forward(x2, params)
    assert out2.shape == (B2, OUTPUT_SIZE)
    assert jnp.allclose(out2, ref2, atol=1e-4, rtol=1e-4), "mismatch vs JAX reference (B=24)"

    print("KERNEL_OK")
</pallas_src>

<mosaic_0001>
module attributes {stable_mosaic.version = 11 : i64} {
  func.func @fedformer_kernel(%arg0: i32, %arg1: memref<8x8xf32, #tpu.memory_space<vmem>>, %arg2: memref<1x128xf32, #tpu.memory_space<vmem>>, %arg3: memref<1x128xf32, #tpu.memory_space<vmem>>, %arg4: memref<32x128xf32, #tpu.memory_space<vmem>>, %arg5: memref<1x32xf32, #tpu.memory_space<vmem>>, %arg6: memref<1x1xf32, #tpu.memory_space<vmem>>, %arg7: memref<1x8xf32, #tpu.memory_space<vmem>>) attributes {dimension_semantics = [#tpu.dimension_semantics<parallel>], iteration_bounds = array<i64: 1>, scalar_prefetch = 0 : i64, scratch_operands = 0 : i64, tpu.core_type = #tpu.core_type<tc>, window_params = [{transform_indices = @transform_0, window_bounds = array<i64: 8, 8>}, {pipeline_mode = #tpu.pipeline_mode<synchronous>, transform_indices = @transform_1, window_bounds = array<i64: 1, 128>}, {pipeline_mode = #tpu.pipeline_mode<synchronous>, transform_indices = @transform_2, window_bounds = array<i64: 1, 128>}, {pipeline_mode = #tpu.pipeline_mode<synchronous>, transform_indices = @transform_3, window_bounds = array<i64: 32, 128>}, {pipeline_mode = #tpu.pipeline_mode<synchronous>, transform_indices = @transform_4, window_bounds = array<i64: 1, 32>}, {pipeline_mode = #tpu.pipeline_mode<synchronous>, transform_indices = @transform_5, window_bounds = array<i64: 1, 1>}, {transform_indices = @transform_6, window_bounds = array<i64: 1, 8>}]} {
    %c0 = arith.constant 0 : index
    %c0_0 = arith.constant 0 : index
    %0 = vector.load %arg2[%c0, %c0_0] : memref<1x128xf32, #tpu.memory_space<vmem>>, vector<1x128xf32>
    %c0_1 = arith.constant 0 : index
    %c0_2 = arith.constant 0 : index
    %1 = vector.load %arg3[%c0_1, %c0_2] : memref<1x128xf32, #tpu.memory_space<vmem>>, vector<1x128xf32>
    %c0_3 = arith.constant 0 : index
    %c0_4 = arith.constant 0 : index
    %2 = vector.load %arg1[%c0_3, %c0_4] : memref<8x8xf32, #tpu.memory_space<vmem>>, vector<8x1xf32>
    %3 = vector.broadcast %2 : vector<8x1xf32> to vector<8x128xf32>
    %4 = vector.broadcast %0 : vector<1x128xf32> to vector<8x128xf32>
    %5 = arith.mulf %3, %4 : vector<8x128xf32>
    %6 = vector.broadcast %1 : vector<1x128xf32> to vector<8x128xf32>
    %7 = arith.addf %5, %6 : vector<8x128xf32>
    %8 = vector.extract_strided_slice %7 {offsets = [0, 0], sizes = [8, 32], strides = [1, 1]} : vector<8x128xf32> to vector<8x32xf32>
    %9 = arith.negf %8 : vector<8x32xf32>
    %10 = math.exp %9 : vector<8x32xf32>
    %cst = arith.constant 1.000000e+00 : f32
    %11 = vector.broadcast %cst : f32 to vector<8x32xf32>
    %12 = arith.addf %11, %10 : vector<8x32xf32>
    %13 = arith.divf %11, %12 : vector<8x32xf32>
    %14 = vector.extract_strided_slice %7 {offsets = [0, 64], sizes = [8, 32], strides = [1, 1]} : vector<8x128xf32> to vector<8x32xf32>
    %15 = math.tanh %14 : vector<8x32xf32>
    %16 = vector.extract_strided_slice %7 {offsets = [0, 96], sizes = [8, 32], strides = [1, 1]} : vector<8x128xf32> to vector<8x32xf32>
    %17 = arith.negf %16 : vector<8x32xf32>
    %18 = math.exp %17 : vector<8x32xf32>
    %cst_5 = arith.constant 1.000000e+00 : f32
    %19 = vector.broadcast %cst_5 : f32 to vector<8x32xf32>
    %20 = arith.addf %19, %18 : vector<8x32xf32>
    %21 = arith.divf %19, %20 : vector<8x32xf32>
    %22 = arith.mulf %13, %15 : vector<8x32xf32>
    %23 = math.tanh %22 : vector<8x32xf32>
    %24 = arith.mulf %21, %23 : vector<8x32xf32>
    %c0_6 = arith.constant 0 : index
    %c1 = arith.constant 1 : index
    %25 = vector.load %arg1[%c0_6, %c1] : memref<8x8xf32, #tpu.memory_space<vmem>>, vector<8x1xf32>
    %26 = vector.broadcast %25 : vector<8x1xf32> to vector<8x128xf32>
    %27 = vector.broadcast %0 : vector<1x128xf32> to vector<8x128xf32>
    %28 = arith.mulf %26, %27 : vector<8x128xf32>
    %29 = vector.broadcast %1 : vector<1x128xf32> to vector<8x128xf32>
    %30 = arith.addf %28, %29 : vector<8x128xf32>
    %c0_7 = arith.constant 0 : index
    %c0_8 = arith.constant 0 : index
    %31 = vector.load %arg4[%c0_7, %c0_8] : memref<32x128xf32, #tpu.memory_space<vmem>>, vector<32x128xf32>
    %cst_9 = arith.constant dense<0.000000e+00> : vector<8x128xf32>
    %32 = tpu.matmul %24, %31, %cst_9 {dimension_numbers = #tpu.dot_dimension_numbers<[1], [0], [0], [1], [0, 0, 1, 1], [], []>} : vector<8x32xf32>, vector<32x128xf32>, vector<8x128xf32> -> vector<8x128xf32>
    %33 = arith.addf %30, %32 : vector<8x128xf32>
    %34 = vector.extract_strided_slice %33 {offsets = [0, 0], sizes = [8, 32], strides = [1, 1]} : vector<8x128xf32> to vector<8x32xf32>
    %35 = arith.negf %34 : vector<8x32xf32>
    %36 = math.exp %35 : vector<8x32xf32>
    %cst_10 = arith.constant 1.000000e+00 : f32
    %37 = vector.broadcast %cst_10 : f32 to vector<8x32xf32>
    %38 = arith.addf %37, %36 : vector<8x32xf32>
    %39 = arith.divf %37, %38 : vector<8x32xf32>
    %40 = vector.extract_strided_slice %33 {offsets = [0, 32], sizes = [8, 32], strides = [1, 1]} : vector<8x128xf32> to vector<8x32xf32>
    %41 = arith.negf %40 : vector<8x32xf32>
    %42 = math.exp %41 : vector<8x32xf32>
    %cst_11 = arith.constant 1.000000e+00 : f32
    %43 = vector.broadcast %cst_11 : f32 to vector<8x32xf32>
    %44 = arith.addf %43, %42 : vector<8x32xf32>
    %45 = arith.divf %43, %44 : vector<8x32xf32>
    %46 = vector.extract_strided_slice %33 {offsets = [0, 64], sizes = [8, 32], strides = [1, 1]} : vector<8x128xf32> to vector<8x32xf32>
    %47 = math.tanh %46 : vector<8x32xf32>
    %48 = vector.extract_strided_slice %33 {offsets = [0, 96], sizes = [8, 32], strides = [1, 1]} : vector<8x128xf32> to vector<8x32xf32>
    %49 = arith.negf %48 : vector<8x32xf32>
    %50 = math.exp %49 : vector<8x32xf32>
    %cst_12 = arith.constant 1.000000e+00 : f32
    %51 = vector.broadcast %cst_12 : f32 to vector<8x32xf32>
    %52 = arith.addf %51, %50 : vector<8x32xf32>
    %53 = arith.divf %51, %52 : vector<8x32xf32>
    %54 = arith.mulf %45, %22 : vector<8x32xf32>
    %55 = arith.mulf %39, %47 : vector<8x32xf32>
    %56 = arith.addf %54, %55 : vector<8x32xf32>
    %57 = math.tanh %56 : vector<8x32xf32>
    %58 = arith.mulf %53, %57 : vector<8x32xf32>
    %c0_13 = arith.constant 0 : index
    %c2 = arith.constant 2 : index
    %59 = vector.load %arg1[%c0_13, %c2] : memref<8x8xf32, #tpu.memory_space<vmem>>, vector<8x1xf32>
    %60 = vector.broadcast %59 : vector<8x1xf32> to vector<8x128xf32>
    %61 = vector.broadcast %0 : vector<1x128xf32> to vector<8x128xf32>
    %62 = arith.mulf %60, %61 : vector<8x128xf32>
    %63 = vector.broadcast %1 : vector<1x128xf32> to vector<8x128xf32>
    %64 = arith.addf %62, %63 : vector<8x128xf32>
    %c0_14 = arith.constant 0 : index
    %c0_15 = arith.constant 0 : index
    %65 = vector.load %arg4[%c0_14, %c0_15] : memref<32x128xf32, #tpu.memory_space<vmem>>, vector<32x128xf32>
    %cst_16 = arith.constant dense<0.000000e+00> : vector<8x128xf32>
    %66 = tpu.matmul %58, %65, %cst_16 {dimension_numbers = #tpu.dot_dimension_numbers<[1], [0], [0], [1], [0, 0, 1, 1], [], []>} : vector<8x32xf32>, vector<32x128xf32>, vector<8x128xf32> -> vector<8x128xf32>
    %67 = arith.addf %64, %66 : vector<8x128xf32>
    %68 = vector.extract_strided_slice %67 {offsets = [0, 0], sizes = [8, 32], strides = [1, 1]} : vector<8x128xf32> to vector<8x32xf32>
    %69 = arith.negf %68 : vector<8x32xf32>
    %70 = math.exp %69 : vector<8x32xf32>
    %cst_17 = arith.constant 1.000000e+00 : f32
    %71 = vector.broadcast %cst_17 : f32 to vector<8x32xf32>
    %72 = arith.addf %71, %70 : vector<8x32xf32>
    %73 = arith.divf %71, %72 : vector<8x32xf32>
    %74 = vector.extract_strided_slice %67 {offsets = [0, 32], sizes = [8, 32], strides = [1, 1]} : vector<8x128xf32> to vector<8x32xf32>
    %75 = arith.negf %74 : vector<8x32xf32>
    %76 = math.exp %75 : vector<8x32xf32>
    %cst_18 = arith.constant 1.000000e+00 : f32
    %77 = vector.broadcast %cst_18 : f32 to vector<8x32xf32>
    %78 = arith.addf %77, %76 : vector<8x32xf32>
    %79 = arith.divf %77, %78 : vector<8x32xf32>
    %80 = vector.extract_strided_slice %67 {offsets = [0, 64], sizes = [8, 32], strides = [1, 1]} : vector<8x128xf32> to vector<8x32xf32>
    %81 = math.tanh %80 : vector<8x32xf32>
    %82 = vector.extract_strided_slice %67 {offsets = [0, 96], sizes = [8, 32], strides = [1, 1]} : vector<8x128xf32> to vector<8x32xf32>
    %83 = arith.negf %82 : vector<8x32xf32>
    %84 = math.exp %83 : vector<8x32xf32>
    %cst_19 = arith.constant 1.000000e+00 : f32
    %85 = vector.broadcast %cst_19 : f32 to vector<8x32xf32>
    %86 = arith.addf %85, %84 : vector<8x32xf32>
    %87 = arith.divf %85, %86 : vector<8x32xf32>
    %88 = arith.mulf %79, %56 : vector<8x32xf32>
    %89 = arith.mulf %73, %81 : vector<8x32xf32>
    %90 = arith.addf %88, %89 : vector<8x32xf32>
    %91 = math.tanh %90 : vector<8x32xf32>
    %92 = arith.mulf %87, %91 : vector<8x32xf32>
    %c0_20 = arith.constant 0 : index
    %c3 = arith.constant 3 : index
    %93 = vector.load %arg1[%c0_20, %c3] : memref<8x8xf32, #tpu.memory_space<vmem>>, vector<8x1xf32>
    %94 = vector.broadcast %93 : vector<8x1xf32> to vector<8x128xf32>
    %95 = vector.broadcast %0 : vector<1x128xf32> to vector<8x128xf32>
    %96 = arith.mulf %94, %95 : vector<8x128xf32>
    %97 = vector.broadcast %1 : vector<1x128xf32> to vector<8x128xf32>
    %98 = arith.addf %96, %97 : vector<8x128xf32>
    %c0_21 = arith.constant 0 : index
    %c0_22 = arith.constant 0 : index
    %99 = vector.load %arg4[%c0_21, %c0_22] : memref<32x128xf32, #tpu.memory_space<vmem>>, vector<32x128xf32>
    %cst_23 = arith.constant dense<0.000000e+00> : vector<8x128xf32>
    %100 = tpu.matmul %92, %99, %cst_23 {dimension_numbers = #tpu.dot_dimension_numbers<[1], [0], [0], [1], [0, 0, 1, 1], [], []>} : vector<8x32xf32>, vector<32x128xf32>, vector<8x128xf32> -> vector<8x128xf32>
    %101 = arith.addf %98, %100 : vector<8x128xf32>
    %102 = vector.extract_strided_slice %101 {offsets = [0, 0], sizes = [8, 32], strides = [1, 1]} : vector<8x128xf32> to vector<8x32xf32>
    %103 = arith.negf %102 : vector<8x32xf32>
    %104 = math.exp %103 : vector<8x32xf32>
    %cst_24 = arith.constant 1.000000e+00 : f32
    %105 = vector.broadcast %cst_24 : f32 to vector<8x32xf32>
    %106 = arith.addf %105, %104 : vector<8x32xf32>
    %107 = arith.divf %105, %106 : vector<8x32xf32>
    %108 = vector.extract_strided_slice %101 {offsets = [0, 32], sizes = [8, 32], strides = [1, 1]} : vector<8x128xf32> to vector<8x32xf32>
    %109 = arith.negf %108 : vector<8x32xf32>
    %110 = math.exp %109 : vector<8x32xf32>
    %cst_25 = arith.constant 1.000000e+00 : f32
    %111 = vector.broadcast %cst_25 : f32 to vector<8x32xf32>
    %112 = arith.addf %111, %110 : vector<8x32xf32>
    %113 = arith.divf %111, %112 : vector<8x32xf32>
    %114 = vector.extract_strided_slice %101 {offsets = [0, 64], sizes = [8, 32], strides = [1, 1]} : vector<8x128xf32> to vector<8x32xf32>
    %115 = math.tanh %114 : vector<8x32xf32>
    %116 = vector.extract_strided_slice %101 {offsets = [0, 96], sizes = [8, 32], strides = [1, 1]} : vector<8x128xf32> to vector<8x32xf32>
    %117 = arith.negf %116 : vector<8x32xf32>
    %118 = math.exp %117 : vector<8x32xf32>
    %cst_26 = arith.constant 1.000000e+00 : f32
    %119 = vector.broadcast %cst_26 : f32 to vector<8x32xf32>
    %120 = arith.addf %119, %118 : vector<8x32xf32>
    %121 = arith.divf %119, %120 : vector<8x32xf32>
    %122 = arith.mulf %113, %90 : vector<8x32xf32>
    %123 = arith.mulf %107, %115 : vector<8x32xf32>
    %124 = arith.addf %122, %123 : vector<8x32xf32>
    %125 = math.tanh %124 : vector<8x32xf32>
    %126 = arith.mulf %121, %125 : vector<8x32xf32>
    %c0_27 = arith.constant 0 : index
    %c4 = arith.constant 4 : index
    %127 = vector.load %arg1[%c0_27, %c4] : memref<8x8xf32, #tpu.memory_space<vmem>>, vector<8x1xf32>
    %128 = vector.broadcast %127 : vector<8x1xf32> to vector<8x128xf32>
    %129 = vector.broadcast %0 : vector<1x128xf32> to vector<8x128xf32>
    %130 = arith.mulf %128, %129 : vector<8x128xf32>
    %131 = vector.broadcast %1 : vector<1x128xf32> to vector<8x128xf32>
    %132 = arith.addf %130, %131 : vector<8x128xf32>
    %c0_28 = arith.constant 0 : index
    %c0_29 = arith.constant 0 : index
    %133 = vector.load %arg4[%c0_28, %c0_29] : memref<32x128xf32, #tpu.memory_space<vmem>>, vector<32x128xf32>
    %cst_30 = arith.constant dense<0.000000e+00> : vector<8x128xf32>
    %134 = tpu.matmul %126, %133, %cst_30 {dimension_numbers = #tpu.dot_dimension_numbers<[1], [0], [0], [1], [0, 0, 1, 1], [], []>} : vector<8x32xf32>, vector<32x128xf32>, vector<8x128xf32> -> vector<8x128xf32>
    %135 = arith.addf %132, %134 : vector<8x128xf32>
    %136 = vector.extract_strided_slice %135 {offsets = [0, 0], sizes = [8, 32], strides = [1, 1]} : vector<8x128xf32> to vector<8x32xf32>
    %137 = arith.negf %136 : vector<8x32xf32>
    %138 = math.exp %137 : vector<8x32xf32>
    %cst_31 = arith.constant 1.000000e+00 : f32
    %139 = vector.broadcast %cst_31 : f32 to vector<8x32xf32>
    %140 = arith.addf %139, %138 : vector<8x32xf32>
    %141 = arith.divf %139, %140 : vector<8x32xf32>
    %142 = vector.extract_strided_slice %135 {offsets = [0, 32], sizes = [8, 32], strides = [1, 1]} : vector<8x128xf32> to vector<8x32xf32>
    %143 = arith.negf %142 : vector<8x32xf32>
    %144 = math.exp %143 : vector<8x32xf32>
    %cst_32 = arith.constant 1.000000e+00 : f32
    %145 = vector.broadcast %cst_32 : f32 to vector<8x32xf32>
    %146 = arith.addf %145, %144 : vector<8x32xf32>
    %147 = arith.divf %145, %146 : vector<8x32xf32>
    %148 = vector.extract_strided_slice %135 {offsets = [0, 64], sizes = [8, 32], strides = [1, 1]} : vector<8x128xf32> to vector<8x32xf32>
    %149 = math.tanh %148 : vector<8x32xf32>
    %150 = vector.extract_strided_slice %135 {offsets = [0, 96], sizes = [8, 32], strides = [1, 1]} : vector<8x128xf32> to vector<8x32xf32>
    %151 = arith.negf %150 : vector<8x32xf32>
    %152 = math.exp %151 : vector<8x32xf32>
    %cst_33 = arith.constant 1.000000e+00 : f32
    %153 = vector.broadcast %cst_33 : f32 to vector<8x32xf32>
    %154 = arith.addf %153, %152 : vector<8x32xf32>
    %155 = arith.divf %153, %154 : vector<8x32xf32>
    %156 = arith.mulf %147, %124 : vector<8x32xf32>
    %157 = arith.mulf %141, %149 : vector<8x32xf32>
    %158 = arith.addf %156, %157 : vector<8x32xf32>
    %159 = math.tanh %158 : vector<8x32xf32>
    %160 = arith.mulf %155, %159 : vector<8x32xf32>
    %c0_34 = arith.constant 0 : index
    %c5 = arith.constant 5 : index
    %161 = vector.load %arg1[%c0_34, %c5] : memref<8x8xf32, #tpu.memory_space<vmem>>, vector<8x1xf32>
    %162 = vector.broadcast %161 : vector<8x1xf32> to vector<8x128xf32>
    %163 = vector.broadcast %0 : vector<1x128xf32> to vector<8x128xf32>
    %164 = arith.mulf %162, %163 : vector<8x128xf32>
    %165 = vector.broadcast %1 : vector<1x128xf32> to vector<8x128xf32>
    %166 = arith.addf %164, %165 : vector<8x128xf32>
    %c0_35 = arith.constant 0 : index
    %c0_36 = arith.constant 0 : index
    %167 = vector.load %arg4[%c0_35, %c0_36] : memref<32x128xf32, #tpu.memory_space<vmem>>, vector<32x128xf32>
    %cst_37 = arith.constant dense<0.000000e+00> : vector<8x128xf32>
    %168 = tpu.matmul %160, %167, %cst_37 {dimension_numbers = #tpu.dot_dimension_numbers<[1], [0], [0], [1], [0, 0, 1, 1], [], []>} : vector<8x32xf32>, vector<32x128xf32>, vector<8x128xf32> -> vector<8x128xf32>
    %169 = arith.addf %166, %168 : vector<8x128xf32>
    %170 = vector.extract_strided_slice %169 {offsets = [0, 0], sizes = [8, 32], strides = [1, 1]} : vector<8x128xf32> to vector<8x32xf32>
    %171 = arith.negf %170 : vector<8x32xf32>
    %172 = math.exp %171 : vector<8x32xf32>
    %cst_38 = arith.constant 1.000000e+00 : f32
    %173 = vector.broadcast %cst_38 : f32 to vector<8x32xf32>
    %174 = arith.addf %173, %172 : vector<8x32xf32>
    %175 = arith.divf %173, %174 : vector<8x32xf32>
    %176 = vector.extract_strided_slice %169 {offsets = [0, 32], sizes = [8, 32], strides = [1, 1]} : vector<8x128xf32> to vector<8x32xf32>
    %177 = arith.negf %176 : vector<8x32xf32>
    %178 = math.exp %177 : vector<8x32xf32>
    %cst_39 = arith.constant 1.000000e+00 : f32
    %179 = vector.broadcast %cst_39 : f32 to vector<8x32xf32>
    %180 = arith.addf %179, %178 : vector<8x32xf32>
    %181 = arith.divf %179, %180 : vector<8x32xf32>
    %182 = vector.extract_strided_slice %169 {offsets = [0, 64], sizes = [8, 32], strides = [1, 1]} : vector<8x128xf32> to vector<8x32xf32>
    %183 = math.tanh %182 : vector<8x32xf32>
    %184 = vector.extract_strided_slice %169 {offsets = [0, 96], sizes = [8, 32], strides = [1, 1]} : vector<8x128xf32> to vector<8x32xf32>
    %185 = arith.negf %184 : vector<8x32xf32>
    %186 = math.exp %185 : vector<8x32xf32>
    %cst_40 = arith.constant 1.000000e+00 : f32
    %187 = vector.broadcast %cst_40 : f32 to vector<8x32xf32>
    %188 = arith.addf %187, %186 : vector<8x32xf32>
    %189 = arith.divf %187, %188 : vector<8x32xf32>
    %190 = arith.mulf %181, %158 : vector<8x32xf32>
    %191 = arith.mulf %175, %183 : vector<8x32xf32>
    %192 = arith.addf %190, %191 : vector<8x32xf32>
    %193 = math.tanh %192 : vector<8x32xf32>
    %194 = arith.mulf %189, %193 : vector<8x32xf32>
    %c0_41 = arith.constant 0 : index
    %c6 = arith.constant 6 : index
    %195 = vector.load %arg1[%c0_41, %c6] : memref<8x8xf32, #tpu.memory_space<vmem>>, vector<8x1xf32>
    %196 = vector.broadcast %195 : vector<8x1xf32> to vector<8x128xf32>
    %197 = vector.broadcast %0 : vector<1x128xf32> to vector<8x128xf32>
    %198 = arith.mulf %196, %197 : vector<8x128xf32>
    %199 = vector.broadcast %1 : vector<1x128xf32> to vector<8x128xf32>
    %200 = arith.addf %198, %199 : vector<8x128xf32>
    %c0_42 = arith.constant 0 : index
    %c0_43 = arith.constant 0 : index
    %201 = vector.load %arg4[%c0_42, %c0_43] : memref<32x128xf32, #tpu.memory_space<vmem>>, vector<32x128xf32>
    %cst_44 = arith.constant dense<0.000000e+00> : vector<8x128xf32>
    %202 = tpu.matmul %194, %201, %cst_44 {dimension_numbers = #tpu.dot_dimension_numbers<[1], [0], [0], [1], [0, 0, 1, 1], [], []>} : vector<8x32xf32>, vector<32x128xf32>, vector<8x128xf32> -> vector<8x128xf32>
    %203 = arith.addf %200, %202 : vector<8x128xf32>
    %204 = vector.extract_strided_slice %203 {offsets = [0, 0], sizes = [8, 32], strides = [1, 1]} : vector<8x128xf32> to vector<8x32xf32>
    %205 = arith.negf %204 : vector<8x32xf32>
    %206 = math.exp %205 : vector<8x32xf32>
    %cst_45 = arith.constant 1.000000e+00 : f32
    %207 = vector.broadcast %cst_45 : f32 to vector<8x32xf32>
    %208 = arith.addf %207, %206 : vector<8x32xf32>
    %209 = arith.divf %207, %208 : vector<8x32xf32>
    %210 = vector.extract_strided_slice %203 {offsets = [0, 32], sizes = [8, 32], strides = [1, 1]} : vector<8x128xf32> to vector<8x32xf32>
    %211 = arith.negf %210 : vector<8x32xf32>
    %212 = math.exp %211 : vector<8x32xf32>
    %cst_46 = arith.constant 1.000000e+00 : f32
    %213 = vector.broadcast %cst_46 : f32 to vector<8x32xf32>
    %214 = arith.addf %213, %212 : vector<8x32xf32>
    %215 = arith.divf %213, %214 : vector<8x32xf32>
    %216 = vector.extract_strided_slice %203 {offsets = [0, 64], sizes = [8, 32], strides = [1, 1]} : vector<8x128xf32> to vector<8x32xf32>
    %217 = math.tanh %216 : vector<8x32xf32>
    %218 = vector.extract_strided_slice %203 {offsets = [0, 96], sizes = [8, 32], strides = [1, 1]} : vector<8x128xf32> to vector<8x32xf32>
    %219 = arith.negf %218 : vector<8x32xf32>
    %220 = math.exp %219 : vector<8x32xf32>
    %cst_47 = arith.constant 1.000000e+00 : f32
    %221 = vector.broadcast %cst_47 : f32 to vector<8x32xf32>
    %222 = arith.addf %221, %220 : vector<8x32xf32>
    %223 = arith.divf %221, %222 : vector<8x32xf32>
    %224 = arith.mulf %215, %192 : vector<8x32xf32>
    %225 = arith.mulf %209, %217 : vector<8x32xf32>
    %226 = arith.addf %224, %225 : vector<8x32xf32>
    %227 = math.tanh %226 : vector<8x32xf32>
    %228 = arith.mulf %223, %227 : vector<8x32xf32>
    %c0_48 = arith.constant 0 : index
    %c7 = arith.constant 7 : index
    %229 = vector.load %arg1[%c0_48, %c7] : memref<8x8xf32, #tpu.memory_space<vmem>>, vector<8x1xf32>
    %230 = vector.broadcast %229 : vector<8x1xf32> to vector<8x128xf32>
    %231 = vector.broadcast %0 : vector<1x128xf32> to vector<8x128xf32>
    %232 = arith.mulf %230, %231 : vector<8x128xf32>
    %233 = vector.broadcast %1 : vector<1x128xf32> to vector<8x128xf32>
    %234 = arith.addf %232, %233 : vector<8x128xf32>
    %c0_49 = arith.constant 0 : index
    %c0_50 = arith.constant 0 : index
    %235 = vector.load %arg4[%c0_49, %c0_50] : memref<32x128xf32, #tpu.memory_space<vmem>>, vector<32x128xf32>
    %cst_51 = arith.constant dense<0.000000e+00> : vector<8x128xf32>
    %236 = tpu.matmul %228, %235, %cst_51 {dimension_numbers = #tpu.dot_dimension_numbers<[1], [0], [0], [1], [0, 0, 1, 1], [], []>} : vector<8x32xf32>, vector<32x128xf32>, vector<8x128xf32> -> vector<8x128xf32>
    %237 = arith.addf %234, %236 : vector<8x128xf32>
    %238 = vector.extract_strided_slice %237 {offsets = [0, 0], sizes = [8, 32], strides = [1, 1]} : vector<8x128xf32> to vector<8x32xf32>
    %239 = arith.negf %238 : vector<8x32xf32>
    %240 = math.exp %239 : vector<8x32xf32>
    %cst_52 = arith.constant 1.000000e+00 : f32
    %241 = vector.broadcast %cst_52 : f32 to vector<8x32xf32>
    %242 = arith.addf %241, %240 : vector<8x32xf32>
    %243 = arith.divf %241, %242 : vector<8x32xf32>
    %244 = vector.extract_strided_slice %237 {offsets = [0, 32], sizes = [8, 32], strides = [1, 1]} : vector<8x128xf32> to vector<8x32xf32>
    %245 = arith.negf %244 : vector<8x32xf32>
    %246 = math.exp %245 : vector<8x32xf32>
    %cst_53 = arith.constant 1.000000e+00 : f32
    %247 = vector.broadcast %cst_53 : f32 to vector<8x32xf32>
    %248 = arith.addf %247, %246 : vector<8x32xf32>
    %249 = arith.divf %247, %248 : vector<8x32xf32>
    %250 = vector.extract_strided_slice %237 {offsets = [0, 64], sizes = [8, 32], strides = [1, 1]} : vector<8x128xf32> to vector<8x32xf32>
    %251 = math.tanh %250 : vector<8x32xf32>
    %252 = vector.extract_strided_slice %237 {offsets = [0, 96], sizes = [8, 32], strides = [1, 1]} : vector<8x128xf32> to vector<8x32xf32>
    %253 = arith.negf %252 : vector<8x32xf32>
    %254 = math.exp %253 : vector<8x32xf32>
    %cst_54 = arith.constant 1.000000e+00 : f32
    %255 = vector.broadcast %cst_54 : f32 to vector<8x32xf32>
    %256 = arith.addf %255, %254 : vector<8x32xf32>
    %257 = arith.divf %255, %256 : vector<8x32xf32>
    %258 = arith.mulf %249, %226 : vector<8x32xf32>
    %259 = arith.mulf %243, %251 : vector<8x32xf32>
    %260 = arith.addf %258, %259 : vector<8x32xf32>
    %261 = math.tanh %260 : vector<8x32xf32>
    %262 = arith.mulf %257, %261 : vector<8x32xf32>
    %c0_55 = arith.constant 0 : index
    %c0_56 = arith.constant 0 : index
    %263 = vector.load %arg5[%c0_55, %c0_56] : memref<1x32xf32, #tpu.memory_space<vmem>>, vector<1x32xf32>
    %cst_57 = arith.constant dense<0.000000e+00> : vector<1x8xf32>
    %264 = tpu.matmul %263, %262, %cst_57 {dimension_numbers = #tpu.dot_dimension_numbers<[1], [1], [0], [0], [0, 0, 1, 0], [], []>} : vector<1x32xf32>, vector<8x32xf32>, vector<1x8xf32> -> vector<1x8xf32>
    %c0_58 = arith.constant 0 : index
    %c0_59 = arith.constant 0 : index
    %265 = vector.load %arg6[%c0_58, %c0_59] : memref<1x1xf32, #tpu.memory_space<vmem>>, vector<1x1xf32>
    %266 = vector.broadcast %265 : vector<1x1xf32> to vector<1x8xf32>
    %267 = arith.addf %264, %266 : vector<1x8xf32>
    %c0_60 = arith.constant 0 : index
    %c0_61 = arith.constant 0 : index
    %268 = vector.load %arg7[%c0_60, %c0_61] : memref<1x8xf32, #tpu.memory_space<vmem>>, vector<1x8xf32>
    tpu.vector_store %arg7[%c0_60, %c0_61], %267 {strides = array<i32>} : memref<1x8xf32, #tpu.memory_space<vmem>>, vector<1x8xf32>,
    return
  }
  func.func @transform_0(%arg0: i32) -> (i32, i32) {
    %c0_i32 = arith.constant 0 : i32
    %c0_i32_0 = arith.constant 0 : i32
    return %arg0, %c0_i32 : i32, i32
  }
  func.func @transform_1(%arg0: i32) -> (i32, i32) {
    %c0_i32 = arith.constant 0 : i32
    %c0_i32_0 = arith.constant 0 : i32
    %c0_i32_1 = arith.constant 0 : i32
    return %c0_i32, %c0_i32_0 : i32, i32
  }
  func.func @transform_2(%arg0: i32) -> (i32, i32) {
    %c0_i32 = arith.constant 0 : i32
    %c0_i32_0 = arith.constant 0 : i32
    %c0_i32_1 = arith.constant 0 : i32
    return %c0_i32, %c0_i32_0 : i32, i32
  }
  func.func @transform_3(%arg0: i32) -> (i32, i32) {
    %c0_i32 = arith.constant 0 : i32
    %c0_i32_0 = arith.constant 0 : i32
    %c0_i32_1 = arith.constant 0 : i32
    return %c0_i32, %c0_i32_0 : i32, i32
  }
  func.func @transform_4(%arg0: i32) -> (i32, i32) {
    %c0_i32 = arith.constant 0 : i32
    %c0_i32_0 = arith.constant 0 : i32
    %c0_i32_1 = arith.constant 0 : i32
    return %c0_i32, %c0_i32_0 : i32, i32
  }
  func.func @transform_5(%arg0: i32) -> (i32, i32) {
    %c0_i32 = arith.constant 0 : i32
    %c0_i32_0 = arith.constant 0 : i32
    %c0_i32_1 = arith.constant 0 : i32
    return %c0_i32, %c0_i32_0 : i32, i32
  }
  func.func @transform_6(%arg0: i32) -> (i32, i32) {
    %c0_i32 = arith.constant 0 : i32
    %c0_i32_0 = arith.constant 0 : i32
    return %c0_i32, %arg0 : i32, i32
  }
}

</mosaic_0001>

<bundles_post_ra>
// kernel: tpu_custom_call.1
= control target key start
LH: loop header
LB: loop body
LE: loop exit
PB: predicated region body
PF: predicated region fallthrough
CT: control target
= control target key end

     0   :  { %s1524_s0 = inlined_call_operand.hbm [shape: f32[8,8], index: 0, kind: input, shape index: {}]   ;;  %s1525_s1 = inlined_call_operand.vmem [shape: f32[1,128], index: 1, kind: input, shape index: {}]   ;;  %s1526_s2 = inlined_call_operand.vmem [shape: f32[1,128], index: 2, kind: input, shape index: {}]   ;;  %s1527_s3 = inlined_call_operand.hbm [shape: f32[32,128], index: 3, kind: input, shape index: {}]   ;;  %s1528_s4 = inlined_call_operand.vmem [shape: f32[1,32], index: 4, kind: input, shape index: {}]   ;;  %s1529_s5 = inlined_call_operand.<no memory space> [shape: f32[1,1], index: 5, kind: input, shape index: {}]   ;;  %s1530_s6 = inlined_call_operand.hbm [shape: f32[1,8], index: 6, kind: output, shape index: {}]  }
   0x1   :  { %v11_v0 = vstv %s1529_s5 }
   0x2   :  { %12 = vst [vmem:[#allocation2] sm:$0x1] %v11_v0 }
   0x3   :  { %13 = vsyncpa [#allocation4], 0 }
   0x4   :  { %14 = vsyncpa [#allocation7], 0 }
   0x5   :  { %15 = vsyncpa [#allocation5], 0  ;;  %s1294_s23 = smov [#allocation3]   ;;  %s1295_s25 = smov [#allocation6]  }
   0x6   :  { %s22_s24 = sshll.u32 %s1294_s23, 4  ;;  %s35_s26 = sshll.u32 %s1295_s25, 4  ;;  %s23_s24 = int_to_ptr.vmem [resolvable:$true] %s22_s24  ;;  %s1351_s26 = int_to_ptr.vmem [resolvable:$true] %s35_s26 }
   0x7   :  { %s1222_s29 = scalar_lea.hbm %s1524_s0, 128 }
   0x8   :  { %p1223_p0 = scmp.ne.s32.totalorder %s1524_s0, %s1222_s29  ;;  %p1226_p1 = scmp.lt.u32.totalorder %s1222_s29, %s1524_s0 }
   0xa   :  { %p1228_p2 = pnand %p1226_p1, %p1223_p0 }
   0xc   :  { %1231 = shalt.err (!%p1228_p2)
}
   0xd   :  { %s1232_s9 = scalar_lea.vmem %s23_s24, 128  ;;  %p1237_p4 = scmp.lt.s32.totalorder %s23_s24, %s23_s24 }
   0xe   :  { %p1233_p3 = scmp.ne.s32.totalorder %s23_s24, %s1232_s9  ;;  %p1238_p5 = scmp.lt.s32.totalorder %s1232_s9, %s1232_s9 }
  0x10   :  { %p1239_p6 = por %p1238_p5, %p1237_p4 }
  0x12   :  { %p1240_p7 = pnand %p1239_p6, %p1233_p3 }
  0x14   :  { %1243 = shalt.err (!%p1240_p7)
}
  0x15   :  { %25 = dma.hbm_to_vmem [thread:$0]  %s1524_s0, 128, %s23_s24, [#allocation4]  }
  0x16   :  { %s1244_s14 = scalar_lea.hbm %s1527_s3, 512 }
  0x17   :  { %p1245_p8 = scmp.ne.s32.totalorder %s1527_s3, %s1244_s14  ;;  %p1248_p9 = scmp.lt.u32.totalorder %s1244_s14, %s1527_s3 }
  0x19   :  { %p1250_p10 = pnand %p1248_p9, %p1245_p8 }
  0x1b   :  { %1253 = shalt.err (!%p1250_p10)
}
  0x1c   :  { %s1254_s19 = scalar_lea.vmem %s1351_s26, 512  ;;  %p1259_p12 = scmp.lt.s32.totalorder %s1351_s26, %s1351_s26 }
  0x1d   :  { %p1255_p11 = scmp.ne.s32.totalorder %s1351_s26, %s1254_s19  ;;  %p1260_p13 = scmp.lt.s32.totalorder %s1254_s19, %s1254_s19 }
  0x1f   :  { %p1261_p0 = por %p1260_p13, %p1259_p12 }
  0x21   :  { %p1262_p1 = pnand %p1261_p0, %p1255_p11 }
  0x23   :  { %1265 = shalt.err (!%p1262_p1)
}
  0x24   :  { %s1296_s0 = smov 128   ;;  %s1297_s20 = smov 8  }
  0x25   :  { %41 = dma.hbm_to_vmem [thread:$0]  %s1527_s3, 512, %s1351_s26, [#allocation7], %s1296_s0, %s1296_s0, %s1297_s20  }
  0x26   :  { %1288 = dma.done.wait [#allocation4], 128  }
  0x27   :  { %1289 = vsyncadd [#allocation4], 4294967168 }
  0x28   :  { %1290 = dma.done.wait [#allocation7], 512  }
  0x29   :  { %1291 = vsyncadd [#allocation7], 4294966784  ;;  %v1298_v1 = vmov 0   ;;  %v1383_v2 = vld [vmem:[#allocation3] sm:$0xff]  ;;  %v1389_v3 = vld [vmem:[%s1525_s1] ss:$0 sm:$0xff] }
  0x2a   :  { %1149 = vset.pattern.permute.xlu0 %v1298_v1  ;;  %v1394_v5 = vld [vmem:[%s1526_s2] ss:$0 sm:$0xff]  ;;  %s1299_s3 = smov 64   ;;  %v98_v15 = vld [vmem:[#allocation6] sm:$0xff]  ;;  %v99_v16 = vld [vmem:[#allocation6 + $0x8] sm:$0xff]  ;;  %v1300_v18 = vmov 0.0|0.0  }
  0x2b   :  { %57 = vperm.xlu0 %1149, %v1383_v2   ;;  %v100_v17 = vld [vmem:[#allocation6 + $0x10] sm:$0xff]  ;;  %1088 = vmatprep.subr.bf16.mxu0 %v1300_v18  ;;  %v1400_v19 = vpack.c.bf16 %v99_v16, %v98_v15  ;;  %v101_v20 = vld [vmem:[#allocation6 + $0x18] sm:$0xff]  ;;  %vm1301_vm0 = vmmov 0   ;;  %v1302_v21 = vmov 0.0   ;;  %s1303_s1 = smov 96   ;;  %v1304_v24 = vmov 1  }
  0x2c   :  { %1014 = vmatprep.mubr.msk.f32.mxu0 %vm1301_vm0, %v1302_v21  ;;  %1094 = vmatprep.subr.bf16.mxu1 %v1300_v18  ;;  %v1408_v22 = vpack.c.bf16 %v101_v20, %v100_v17  ;;  %s1305_s2 = smov 32   ;;  %vm105_vm1 = vcmask 261120   ;;  %v1306_v46 = vmov 2   ;;  %s1312_s29 = smov [#allocation8]   ;;  %vm932_vm2 = vcmask 57344  }
  0x2d   :  { %1025 = vmatprep.mubr.msk.f32.mxu1 %vm1301_vm0, %v1302_v21  ;;  %1090 = vmatpush3.bf16.msra.mxu0 %v1400_v19  ;;  %s940_s30 = sshll.u32 %s1312_s29, 4  ;;  %s941_s30 = int_to_ptr.vmem [resolvable:$true] %s940_s30 }
  0x2e   :  { %1096 = vmatpush3.bf16.msra.mxu1 %v1400_v19  ;;  %1091 = vmatprep.subr.bf16.mxu0 %v1300_v18  ;;  %s1266_s7 = scalar_lea.vmem %s941_s30, 16  ;;  %s1270_s5 = scalar_lea.vmem %s941_s30, 32 }
  0x2f   :  { %1097 = vmatprep.subr.bf16.mxu1 %v1300_v18  ;;  %1150 = vset.pattern.permute.xlu0 %v1304_v24  ;;  %p1267_p2 = scmp.ne.s32.totalorder %s941_s30, %s1266_s7  ;;  %p1271_p3 = scmp.lt.s32.totalorder %s941_s30, %s941_s30 }
  0x30   :  { %1151 = vset.pattern.permute.xlu1 %v1306_v46  ;;  %p1272_p4 = scmp.lt.s32.totalorder %s1270_s5, %s1266_s7 }
  0x31   :  { %1093 = vmatpush3.bf16.msra.mxu0 %v1408_v22 }
  0x32   :  { %1099 = vmatpush3.bf16.msra.mxu1 %v1408_v22  ;;  %1100 = vmatprep.subr.bf16.mxu0 %v1300_v18  ;;  %p1273_p5 = por %p1272_p4, %p1271_p3 }
  0x33   :  { %1106 = vmatprep.subr.bf16.mxu1 %v1300_v18 }
  0x34   :  { %p1274_p6 = pnand %p1273_p5, %p1267_p2 }
  0xaa   :  { %v58_v4 = vpop.permute.xlu0 %57 }
  0xab   :  { %v66_v6 = vmul.f32 %v1389_v3, %v58_v4 }
  0xad   :  { %v73_v7 = vadd.f32 %v1394_v5, %v66_v6 }
  0xaf   :  { %1158 = vtanh.f32 %v73_v7  ;;  %v952_v9 = vmul.f32 -1.442695, %v73_v7  ;;  %v1307_v7 = vmov 3  }
  0xb1   :  { %1160 = vpow2.f32 %v952_v9 }
  0xb9   :  { %v1159_v8 = vpop.eup %1158 }
  0xba   :  { %82 = vrot.lane.b32.xlu0 %v1159_v8, %s1299_s3 }
  0xbb   :  { %v1161_v10 = vpop.eup %1160 }
  0xbc   :  { %v77_v11 = vadd.f32 1.0, %v1161_v10 }
  0xbe   :  { %1162 = vrcp.f32 %v77_v11  ;;  %93 = vperm.xlu0 %1150, %v1383_v2  }
  0xc2   :  { %1152 = vset.pattern.permute.xlu0 %v1307_v7 }
  0xc8   :  { %v1163_v12 = vpop.eup %1162 }
 0x12c   :  { %v83_v13 = vpop.permute.xlu0 %82 }
 0x12d   :  { %v85_v14 = vmul.f32 %v1163_v12, %v83_v13 }
 0x12f   :  { %1164 = vtanh.f32 %v85_v14 }
 0x139   :  { %v1165_v23 = vpop.eup %1164 }
 0x13a   :  { %88 = vrot.lane.b32.xlu1 %v1165_v23, %s1303_s1 }
 0x13d   :  { %v94_v28 = vpop.permute.xlu0 %93 }
 0x13e   :  { %v96_v29 = vmul.f32 %v1389_v3, %v94_v28 }
 0x140   :  { %v97_v30 = vadd.f32 %v1394_v5, %v96_v29 }
 0x1ac   :  { %v89_v25 = vpop.permute.xlu1 %88 }
 0x1ad   :  { %v91_v26 = vmul.f32 %v1163_v12, %v89_v25 }
 0x1af   :  { %103 = vrot.lane.b32.xlu1 %v91_v26, %s1305_s2 }
 0x221   :  { %v104_v27 = vpop.permute.xlu1 %103 }
 0x222   :  { %1015 = vmatmul.mubr.msk.f32.vlgmr.msra.gmra.mrb[0].mxu0 %vm105_vm1, %v104_v27 }
 0x223   :  { %1102 = vmatpush3.bf16.msra.mxu0 %v1400_v19  ;;  %1036 = vmatprep.mubr.msk.f32.mxu0 %vm1301_vm0, %v1302_v21 }
 0x224   :  { %1103 = vmatprep.subr.bf16.mxu0 %v1300_v18 }
 0x227   :  { %1105 = vmatpush3.bf16.msra.mxu0 %v1408_v22 }
 0x228   :  { %1112 = vmatprep.subr.bf16.mxu0 %v1300_v18 }
 0x2f5   :  { %v174_v31 = vpop.f32.mrb[0].mxu0 }
 0x2f6   :  { %v178_v32 = vadd.f32 %v174_v31, %v97_v30  ;;  %v1016_v33 = vpop.f32.mrb[1].mxu0 }
 0x2f8   :  { %1166 = vtanh.f32 %v178_v32  ;;  %v954_v35 = vmul.f32 -1.442695, %v178_v32  ;;  %v1308_v32 = vmov 4  }
 0x2fa   :  { %1168 = vpow2.f32 %v954_v35 }
 0x302   :  { %v1167_v34 = vpop.eup %1166 }
 0x303   :  { %192 = vrot.lane.b32.xlu1 %v1167_v34, %s1299_s3 }
 0x304   :  { %v1169_v36 = vpop.eup %1168 }
 0x305   :  { %v182_v37 = vadd.f32 1.0, %v1169_v36 }
 0x307   :  { %187 = vrot.lane.b32.xlu1 %v85_v14, %s1305_s2  ;;  %1170 = vrcp.f32 %v182_v37 }
 0x311   :  { %v1171_v38 = vpop.eup %1170 }
 0x375   :  { %v193_v39 = vpop.permute.xlu1 %192 }
 0x376   :  { %v195_v40 = vmul.f32 %v1171_v38, %v193_v39 }
 0x378   :  { %197 = vrot.lane.b32.xlu0 %v195_v40, %s1305_s2 }
 0x379   :  { %v188_v41 = vpop.permute.xlu1 %187 }
 0x37a   :  { %v190_v42 = vmul.f32 %v1171_v38, %v188_v41 }
 0x3ea   :  { %v198_v43 = vpop.permute.xlu0 %197 }
 0x3eb   :  { %v200_v44 = vadd.f32 %v198_v43, %v190_v42 }
 0x3ed   :  { %1172 = vtanh.f32 %v200_v44 }
 0x3f7   :  { %v1173_v45 = vpop.eup %1172 }
 0x3f8   :  { %203 = vrot.lane.b32.xlu1 %v1173_v45, %s1299_s3 }
 0x3fc   :  { %208 = vperm.xlu1 %1151, %v1383_v2  }
 0x46a   :  { %v204_v47 = vpop.permute.xlu1 %203 }
 0x46b   :  { %v206_v48 = vmul.f32 %v1171_v38, %v204_v47 }
 0x46d   :  { %214 = vrot.lane.b32.xlu0 %v206_v48, %s1305_s2 }
 0x47b   :  { %v209_v50 = vpop.permute.xlu1 %208 }
 0x47c   :  { %v211_v51 = vmul.f32 %v1389_v3, %v209_v50 }
 0x47e   :  { %v212_v52 = vadd.f32 %v1394_v5, %v211_v51 }
 0x4df   :  { %v215_v49 = vpop.permute.xlu0 %214 }
 0x4e0   :  { %1026 = vmatmul.mubr.msk.f32.vlgmr.msra.gmra.mrb[0].mxu1 %vm105_vm1, %v215_v49 }
 0x4e1   :  { %1108 = vmatpush3.bf16.msra.mxu1 %v1400_v19  ;;  %1047 = vmatprep.mubr.msk.f32.mxu1 %vm1301_vm0, %v1302_v21 }
 0x4e2   :  { %1109 = vmatprep.subr.bf16.mxu1 %v1300_v18 }
 0x4e5   :  { %1111 = vmatpush3.bf16.msra.mxu1 %v1408_v22 }
 0x4e6   :  { %1118 = vmatprep.subr.bf16.mxu1 %v1300_v18 }
 0x5b3   :  { %v284_v53 = vpop.f32.mrb[0].mxu1 }
 0x5b4   :  { %v288_v54 = vadd.f32 %v284_v53, %v212_v52  ;;  %v1027_v55 = vpop.f32.mrb[1].mxu1  ;;  %v1309_v53 = vmov 5  }
 0x5b6   :  { %1174 = vtanh.f32 %v288_v54  ;;  %v956_v57 = vmul.f32 -1.442695, %v288_v54 }
 0x5b8   :  { %1176 = vpow2.f32 %v956_v57 }
 0x5c0   :  { %v1175_v56 = vpop.eup %1174 }
 0x5c1   :  { %298 = vrot.lane.b32.xlu0 %v1175_v56, %s1299_s3 }
 0x5c2   :  { %v1177_v58 = vpop.eup %1176 }
 0x5c3   :  { %v292_v59 = vadd.f32 1.0, %v1177_v58 }
 0x5c5   :  { %1178 = vrcp.f32 %v292_v59 }
 0x5cf   :  { %v1179_v60 = vpop.eup %1178 }
 0x5d0   :  { %v296_v63 = vmul.f32 %v1179_v60, %v200_v44 }
 0x633   :  { %v299_v61 = vpop.permute.xlu0 %298 }
 0x634   :  { %v301_v62 = vmul.f32 %v1179_v60, %v299_v61 }
 0x636   :  { %303 = vrot.lane.b32.xlu1 %v301_v62, %s1305_s2 }
 0x6a8   :  { %v304_v0 = vpop.permute.xlu1 %303 }
 0x6a9   :  { %v306_v4 = vadd.f32 %v304_v0, %v296_v63 }
 0x6ab   :  { %1180 = vtanh.f32 %v306_v4 }
 0x6b5   :  { %v1181_v6 = vpop.eup %1180 }
 0x6b6   :  { %309 = vrot.lane.b32.xlu0 %v1181_v6, %s1299_s3 }
 0x6ba   :  { %314 = vperm.xlu0 %1152, %v1383_v2  }
 0x6be   :  { %1153 = vset.pattern.permute.xlu0 %v1308_v32 }
 0x728   :  { %v310_v8 = vpop.permute.xlu0 %309 }
 0x729   :  { %v312_v9 = vmul.f32 %v1179_v60, %v310_v8 }
 0x72b   :  { %320 = vrot.lane.b32.xlu1 %v312_v9, %s1305_s2 }
 0x739   :  { %v315_v11 = vpop.permute.xlu0 %314 }
 0x73a   :  { %v317_v12 = vmul.f32 %v1389_v3, %v315_v11  ;;  %v1310_v11 = vmov 6  }
 0x73c   :  { %v318_v13 = vadd.f32 %v1394_v5, %v317_v12 }
 0x79d   :  { %v321_v10 = vpop.permute.xlu1 %320 }
 0x79e   :  { %1037 = vmatmul.mubr.msk.f32.vlgmr.msra.gmra.mrb[2].mxu0 %vm105_vm1, %v321_v10 }
 0x79f   :  { %1114 = vmatpush3.bf16.msra.mxu0 %v1400_v19  ;;  %1058 = vmatprep.mubr.msk.f32.mxu0 %vm1301_vm0, %v1302_v21 }
 0x7a0   :  { %1115 = vmatprep.subr.bf16.mxu0 %v1300_v18 }
 0x7a3   :  { %1117 = vmatpush3.bf16.msra.mxu0 %v1408_v22 }
 0x7a4   :  { %1124 = vmatprep.subr.bf16.mxu0 %v1300_v18 }
 0x871   :  { %v390_v14 = vpop.f32.mrb[2].mxu0 }
 0x872   :  { %v394_v15 = vadd.f32 %v390_v14, %v318_v13  ;;  %v1038_v16 = vpop.f32.mrb[3].mxu0 }
 0x874   :  { %1182 = vtanh.f32 %v394_v15  ;;  %v958_v20 = vmul.f32 -1.442695, %v394_v15 }
 0x876   :  { %1184 = vpow2.f32 %v958_v20 }
 0x87e   :  { %v1183_v17 = vpop.eup %1182 }
 0x87f   :  { %404 = vrot.lane.b32.xlu1 %v1183_v17, %s1299_s3 }
 0x880   :  { %v1185_v23 = vpop.eup %1184 }
 0x881   :  { %v398_v24 = vadd.f32 1.0, %v1185_v23 }
 0x883   :  { %1186 = vrcp.f32 %v398_v24 }
 0x88d   :  { %v1187_v25 = vpop.eup %1186 }
 0x88e   :  { %v402_v28 = vmul.f32 %v1187_v25, %v306_v4 }
 0x8f1   :  { %v405_v26 = vpop.permute.xlu1 %404 }
 0x8f2   :  { %v407_v27 = vmul.f32 %v1187_v25, %v405_v26 }
 0x8f4   :  { %409 = vrot.lane.b32.xlu1 %v407_v27, %s1305_s2 }
 0x966   :  { %v410_v29 = vpop.permute.xlu1 %409 }
 0x967   :  { %v412_v30 = vadd.f32 %v410_v29, %v402_v28 }
 0x969   :  { %1188 = vtanh.f32 %v412_v30 }
 0x973   :  { %v1189_v31 = vpop.eup %1188 }
 0x974   :  { %415 = vrot.lane.b32.xlu0 %v1189_v31, %s1299_s3 }
 0x978   :  { %420 = vperm.xlu0 %1153, %v1383_v2  }
 0x97c   :  { %1154 = vset.pattern.permute.xlu0 %v1309_v53 }
 0x9e6   :  { %v416_v33 = vpop.permute.xlu0 %415 }
 0x9e7   :  { %v418_v34 = vmul.f32 %v1187_v25, %v416_v33 }
 0x9e9   :  { %426 = vrot.lane.b32.xlu1 %v418_v34, %s1305_s2 }
 0x9f7   :  { %v421_v36 = vpop.permute.xlu0 %420 }
 0x9f8   :  { %v423_v37 = vmul.f32 %v1389_v3, %v421_v36 }
 0x9fa   :  { %v424_v38 = vadd.f32 %v1394_v5, %v423_v37 }
 0xa5b   :  { %v427_v35 = vpop.permute.xlu1 %426 }
 0xa5c   :  { %1048 = vmatmul.mubr.msk.f32.vlgmr.msra.gmra.mrb[2].mxu1 %vm105_vm1, %v427_v35  ;;  %v1311_v35 = vmov 7  }
 0xa5d   :  { %1120 = vmatpush3.bf16.msra.mxu1 %v1400_v19  ;;  %1069 = vmatprep.mubr.msk.f32.mxu1 %vm1301_vm0, %v1302_v21 }
 0xa5e   :  { %1121 = vmatprep.subr.bf16.mxu1 %v1300_v18 }
 0xa61   :  { %1123 = vmatpush3.bf16.msra.mxu1 %v1408_v22 }
 0xa62   :  { %1083 = vmatprep.subr.mxu1 %v1302_v21 }
 0xb2f   :  { %v496_v39 = vpop.f32.mrb[2].mxu1 }
 0xb30   :  { %v500_v40 = vadd.f32 %v496_v39, %v424_v38  ;;  %v1049_v41 = vpop.f32.mrb[3].mxu1 }
 0xb32   :  { %1190 = vtanh.f32 %v500_v40  ;;  %v960_v43 = vmul.f32 -1.442695, %v500_v40 }
 0xb34   :  { %1192 = vpow2.f32 %v960_v43 }
 0xb3c   :  { %v1191_v42 = vpop.eup %1190 }
 0xb3d   :  { %510 = vrot.lane.b32.xlu1 %v1191_v42, %s1299_s3 }
 0xb3e   :  { %v1193_v44 = vpop.eup %1192 }
 0xb3f   :  { %v504_v45 = vadd.f32 1.0, %v1193_v44 }
 0xb41   :  { %1194 = vrcp.f32 %v504_v45 }
 0xb4b   :  { %v1195_v46 = vpop.eup %1194 }
 0xb4c   :  { %v508_v49 = vmul.f32 %v1195_v46, %v412_v30 }
 0xbaf   :  { %v511_v47 = vpop.permute.xlu1 %510 }
 0xbb0   :  { %v513_v48 = vmul.f32 %v1195_v46, %v511_v47 }
 0xbb2   :  { %515 = vrot.lane.b32.xlu1 %v513_v48, %s1305_s2 }
 0xc24   :  { %v516_v50 = vpop.permute.xlu1 %515 }
 0xc25   :  { %v518_v51 = vadd.f32 %v516_v50, %v508_v49 }
 0xc27   :  { %1196 = vtanh.f32 %v518_v51 }
 0xc31   :  { %v1197_v52 = vpop.eup %1196 }
 0xc32   :  { %521 = vrot.lane.b32.xlu0 %v1197_v52, %s1299_s3  ;;  %v844_v52 = vld [vmem:[#allocation2] sm:$0x1] }
 0xc36   :  { %526 = vperm.xlu0 %1154, %v1383_v2  }
 0xc3a   :  { %1155 = vset.pattern.permute.xlu0 %v1310_v11 }
 0xca4   :  { %v522_v54 = vpop.permute.xlu0 %521 }
 0xca5   :  { %v524_v55 = vmul.f32 %v1195_v46, %v522_v54 }
 0xca7   :  { %532 = vrot.lane.b32.xlu1 %v524_v55, %s1305_s2 }
 0xcb5   :  { %v527_v57 = vpop.permute.xlu0 %526 }
 0xcb6   :  { %v529_v58 = vmul.f32 %v1389_v3, %v527_v57  ;;  %v850_v57 = vlaneseq }
 0xcb8   :  { %v530_v59 = vadd.f32 %v1394_v5, %v529_v58  ;;  %v851_v58 = vshrl.u32 %v850_v57, 7 }
 0xd19   :  { %v533_v56 = vpop.permute.xlu1 %532 }
 0xd1a   :  { %1059 = vmatmul.mubr.msk.f32.vlgmr.msra.gmra.mrb[4].mxu0 %vm105_vm1, %v533_v56  ;;  %v843_v56 = vld [vmem:[%s1528_s4] sm:$0x1] }
 0xd1b   :  { %1126 = vmatpush3.bf16.msra.mxu0 %v1400_v19  ;;  %1080 = vmatprep.mubr.msk.f32.mxu0 %vm1301_vm0, %v1302_v21 }
 0xd1c   :  { %1127 = vmatprep.subr.bf16.mxu0 %v1300_v18 }
 0xd1f   :  { %1129 = vmatpush3.bf16.msra.mxu0 %v1408_v22 }
 0xded   :  { %v602_v60 = vpop.f32.mrb[4].mxu0 }
 0xdee   :  { %v606_v61 = vadd.f32 %v602_v60, %v530_v59  ;;  %v1060_v62 = vpop.f32.mrb[5].mxu0  ;;  %v852_v59 = vsub.s32 0, %v851_v58 }
 0xdf0   :  { %1198 = vtanh.f32 %v606_v61  ;;  %v962_v19 = vmul.f32 -1.442695, %v606_v61 }
 0xdf2   :  { %1200 = vpow2.f32 %v962_v19 }
 0xdfa   :  { %v1199_v63 = vpop.eup %1198 }
 0xdfb   :  { %616 = vrot.lane.b32.xlu1 %v1199_v63, %s1299_s3 }
 0xdfc   :  { %v1201_v0 = vpop.eup %1200 }
 0xdfd   :  { %v610_v4 = vadd.f32 1.0, %v1201_v0 }
 0xdff   :  { %1202 = vrcp.f32 %v610_v4 }
 0xe09   :  { %v1203_v18 = vpop.eup %1202 }
 0xe0a   :  { %v614_v7 = vmul.f32 %v1203_v18, %v518_v51 }
 0xe6d   :  { %v617_v6 = vpop.permute.xlu1 %616 }
 0xe6e   :  { %v619_v22 = vmul.f32 %v1203_v18, %v617_v6 }
 0xe70   :  { %621 = vrot.lane.b32.xlu1 %v619_v22, %s1305_s2 }
 0xee2   :  { %v622_v8 = vpop.permute.xlu1 %621 }
 0xee3   :  { %v624_v9 = vadd.f32 %v622_v8, %v614_v7 }
 0xee5   :  { %1204 = vtanh.f32 %v624_v9 }
 0xeef   :  { %v1205_v10 = vpop.eup %1204 }
 0xef0   :  { %627 = vrot.lane.b32.xlu0 %v1205_v10, %s1299_s3 }
 0xef4   :  { %632 = vperm.xlu0 %1155, %v1383_v2  }
 0xef8   :  { %1156 = vset.pattern.permute.xlu0 %v1311_v35 }
 0xf62   :  { %v628_v12 = vpop.permute.xlu0 %627 }
 0xf63   :  { %v630_v13 = vmul.f32 %v1203_v18, %v628_v12 }
 0xf65   :  { %638 = vrot.lane.b32.xlu1 %v630_v13, %s1305_s2 }
 0xf73   :  { %v633_v15 = vpop.permute.xlu0 %632 }
 0xf74   :  { %v635_v16 = vmul.f32 %v1389_v3, %v633_v15 }
 0xf76   :  { %v636_v17 = vadd.f32 %v1394_v5, %v635_v16 }
 0xfd7   :  { %v639_v14 = vpop.permute.xlu1 %638 }
 0xfd8   :  { %1070 = vmatmul.mubr.msk.f32.vlgmr.msra.gmra.mrb[4].mxu1 %vm105_vm1, %v639_v14 }
 0xfd9   :  { %1085 = vmatprep.mubr.msk.f32.mxu1 %vm1301_vm0, %v1302_v21 }
0x10ab   :  { %v708_v20 = vpop.f32.mrb[4].mxu1 }
0x10ac   :  { %v712_v23 = vadd.f32 %v708_v20, %v636_v17  ;;  %v1071_v24 = vpop.f32.mrb[5].mxu1 }
0x10ae   :  { %1206 = vtanh.f32 %v712_v23  ;;  %v964_v26 = vmul.f32 -1.442695, %v712_v23 }
0x10b0   :  { %1208 = vpow2.f32 %v964_v26 }
0x10b8   :  { %v1207_v25 = vpop.eup %1206 }
0x10b9   :  { %722 = vrot.lane.b32.xlu1 %v1207_v25, %s1299_s3 }
0x10ba   :  { %v1209_v27 = vpop.eup %1208 }
0x10bb   :  { %v716_v28 = vadd.f32 1.0, %v1209_v27 }
0x10bd   :  { %1210 = vrcp.f32 %v716_v28 }
0x10c7   :  { %v1211_v29 = vpop.eup %1210 }
0x10c8   :  { %v720_v31 = vmul.f32 %v1211_v29, %v624_v9 }
0x112b   :  { %v723_v30 = vpop.permute.xlu1 %722 }
0x112c   :  { %v725_v21 = vmul.f32 %v1211_v29, %v723_v30 }
0x112e   :  { %727 = vrot.lane.b32.xlu1 %v725_v21, %s1305_s2 }
0x11a0   :  { %v728_v32 = vpop.permute.xlu1 %727 }
0x11a1   :  { %v730_v33 = vadd.f32 %v728_v32, %v720_v31 }
0x11a3   :  { %1212 = vtanh.f32 %v730_v33 }
0x11ad   :  { %v1213_v34 = vpop.eup %1212 }
0x11ae   :  { %733 = vrot.lane.b32.xlu0 %v1213_v34, %s1299_s3 }
0x11b2   :  { %738 = vperm.xlu0 %1156, %v1383_v2  }
0x11b6   :  { %1157 = vset.pattern.permute.xlu0 %v1298_v1 }
0x1220   :  { %v734_v36 = vpop.permute.xlu0 %733 }
0x1221   :  { %v736_v37 = vmul.f32 %v1211_v29, %v734_v36 }
0x1223   :  { %744 = vrot.lane.b32.xlu1 %v736_v37, %s1305_s2 }
0x1231   :  { %v739_v39 = vpop.permute.xlu0 %738 }
0x1232   :  { %v741_v40 = vmul.f32 %v1389_v3, %v739_v39 }
0x1234   :  { %v742_v41 = vadd.f32 %v1394_v5, %v741_v40 }
0x1295   :  { %v745_v38 = vpop.permute.xlu1 %744 }
0x1296   :  { %1081 = vmatmul.mubr.msk.f32.vlgmr.msra.gmra.mrb[6].mxu0 %vm105_vm1, %v745_v38 }
0x1369   :  { %v814_v42 = vpop.f32.mrb[6].mxu0 }
0x136a   :  { %v818_v43 = vadd.f32 %v814_v42, %v742_v41  ;;  %v1082_v44 = vpop.f32.mrb[7].mxu0 }
0x136c   :  { %1214 = vtanh.f32 %v818_v43  ;;  %v966_v1 = vmul.f32 -1.442695, %v818_v43 }
0x136e   :  { %1216 = vpow2.f32 %v966_v1 }
0x1376   :  { %v1215_v45 = vpop.eup %1214 }
0x1377   :  { %828 = vrot.lane.b32.xlu1 %v1215_v45, %s1299_s3 }
0x1378   :  { %v1217_v2 = vpop.eup %1216 }
0x1379   :  { %v822_v46 = vadd.f32 1.0, %v1217_v2 }
0x137b   :  { %1218 = vrcp.f32 %v822_v46 }
0x1385   :  { %v1219_v47 = vpop.eup %1218 }
0x1386   :  { %v826_v3 = vmul.f32 %v1219_v47, %v730_v33 }
0x13e9   :  { %v829_v48 = vpop.permute.xlu1 %828 }
0x13ea   :  { %v831_v49 = vmul.f32 %v1219_v47, %v829_v48 }
0x13ec   :  { %833 = vrot.lane.b32.xlu1 %v831_v49, %s1305_s2 }
0x145e   :  { %v834_v50 = vpop.permute.xlu1 %833 }
0x145f   :  { %v836_v5 = vadd.f32 %v834_v50, %v826_v3 }
0x1461   :  { %1220 = vtanh.f32 %v836_v5 }
0x146b   :  { %v1221_v51 = vpop.eup %1220 }
0x146c   :  { %839 = vrot.lane.b32.xlu0 %v1221_v51, %s1299_s3 }
0x1470   :  { %847 = vperm.xlu0 %1157, %v844_v52  }
0x14de   :  { %v840_v53 = vpop.permute.xlu0 %839 }
0x14df   :  { %v842_v54 = vmul.f32 %v1219_v47, %v840_v53 }
0x14e1   :  { %855 = vrot.lane.b32.xlu1 %v842_v54, %s1305_s2 }
0x14ef   :  { %v848_v60 = vpop.permute.xlu0 %847 }
0x14f0   :  { %v853_v61 = vrot.slane %v848_v60, %v852_v59 }
0x1553   :  { %v856_v55 = vpop.permute.xlu1 %855 }
0x1554   :  { %1084 = vmatpush3.xpose.msk.msra.mxu1 %vm105_vm1, %v856_v55 }
0x1557   :  { %1086 = vmatmul.mubr.msk.f32.vlgmr.msra.gmra.mrb[6].mxu1 %vm105_vm1, %v843_v56 }
0x162a   :  { %v928_v62 = vpop.f32.mrb[6].mxu1 }
0x162b   :  { %v929_v63 = vadd.f32 %v928_v62, %v853_v61  ;;  %v1087_v19 = vpop.f32.mrb[7].mxu1 }
0x162d   :  { %933 = vst.msk [vmem:[#allocation8] sm:$0x1] %vm932_vm2, %v929_v63 }
0x162e   :  { %1277 = shalt.err (!%p1274_p6)
}
0x162f   :  { %s1278_s9 = scalar_lea.hbm %s1530_s6, 16 }
0x1630   :  { %p1279_p7 = scmp.ne.s32.totalorder %s1530_s6, %s1278_s9  ;;  %p1282_p8 = scmp.lt.u32.totalorder %s1278_s9, %s1530_s6 }
0x1632   :  { %p1284_p9 = pnand %p1282_p8, %p1279_p7 }
0x1634   :  { %1287 = shalt.err (!%p1284_p9)
}
0x1635   :  { %943 = dma.vmem_to_hbm [thread:$0]  %s941_s30, 16, %s1530_s6, [#allocation5]  }
0x1636   :  { %1292 = dma.done.wait [#allocation5], 16  }
0x1637   :  { %1293 = vsyncadd [#allocation5], 4294967280 }
0x1638   :  { %947 = vsyncpa [#allocation4], 1 }
0x1639   :  { %948 = vsyncpa [#allocation7], 1 }
0x163a   :  { %949 = vsyncpa [#allocation5], 1 }

</bundles_post_ra>
